<compile_context>
chip_gen: v7x
topology: tpu7x:2x2x1
jax: 0.10.0
libtpu: 0.0.40
codegen_flags: <defaults>
</compile_context>

<pallas_src>
import math

import jax
import jax.numpy as jnp
from jax.experimental import pallas as pl
from jax.experimental.pallas import tpu as pltpu

LANE = 128
GATHER_UNROLL = 8


def _round_up(x, m):
    return (x + m - 1) // m * m


# ----------------------------------------------------------------------------------
# Pass 1: table-wide projection (one lane-dense MXU matmul per branch).
#   P = feat @ Wa            S = feat @ Wb + bh
# ----------------------------------------------------------------------------------
def _project_kernel(x_ref, wa_ref, wb_ref, bh_ref, p_ref, s_ref):
    x = x_ref[...]
    p_ref[...] = jnp.dot(x, wa_ref[...], preferred_element_type=jnp.float32)
    s_ref[...] = (jnp.dot(x, wb_ref[...], preferred_element_type=jnp.float32)
                  + bh_ref[...])


# ----------------------------------------------------------------------------------
# Pass 2: per-node-tile gather of projected anchor rows + dist nonlinearity + combine.
# ----------------------------------------------------------------------------------
def _combine_kernel(idx_ref,                  # SMEM scalar-prefetch: flat dists_argmax [Np*K]
                    d_ref,                    # [TN, K]   dists_max tile
                    p_ref,                    # [Np, Op]  resident projected-anchor table
                    s_ref,                    # [TN, Op]  self projection (+bh) for this tile
                    w1_ref, b1_ref, w2_ref,   # dist_compute params (lane padded to Op)
                    b2_ref,                   # SMEM scalar (1,)
                    out_ref,                  # [TN, Op]
                    gbuf_ref):                # VMEM scratch [TN*K, Op]
    TN, K = d_ref.shape
    Op = out_ref.shape[-1]
    i = pl.program_id(0)
    base = i * (TN * K)

    # dist_compute = Nonlinear(1, O, 1): d' = relu(d*W1^T + b1) @ W2^T + b2
    # (computed before the gather loop so it is off the gather critical path)
    d = d_ref[...]                                                    # [TN, K]
    h = jnp.maximum(d[..., None] * w1_ref[...] + b1_ref[...], 0.0)    # [TN, K, Op]
    d_new = jnp.sum(h * w2_ref[...], axis=-1) + b2_ref[0]             # [TN, K]

    # Gather: one projected (1, Op) row per (node, anchor); indices from SMEM.
    # Direct row stores into the scratch slab (no concatenate), manual 8-way unroll.
    def gather_group(g, carry):
        j0 = pl.multiple_of(g * GATHER_UNROLL, GATHER_UNROLL)
        for u in range(GATHER_UNROLL):
            j = j0 + u
            gbuf_ref[pl.ds(j, 1), :] = p_ref[pl.ds(idx_ref[base + j], 1), :]
        return carry

    jax.lax.fori_loop(0, (TN * K) // GATHER_UNROLL, gather_group, 0)

    # Combine: relu(d' * P[idx] + S) then mean over K (folded as a 1/K scaled sum).
    gath = gbuf_ref[...].reshape(TN, K, Op)                           # [TN, K, Op]
    msg = jnp.maximum(gath * d_new[..., None] + s_ref[...][:, None, :], 0.0)
    out_ref[...] = (jnp.sum(msg, axis=1) * (1.0 / K)).astype(out_ref.dtype)


# ----------------------------------------------------------------------------------
# Layer wrapper
# ----------------------------------------------------------------------------------
def pgnn_layer(feature, dists_max, dists_argmax, params, *, tile_n=512):
    N, F = feature.shape
    K = dists_max.shape[1]
    O = params["wa"].shape[1]

    Fp = _round_up(F, LANE)
    Op = _round_up(O, LANE)

    n8 = _round_up(N, 8)
    # clamp so the grid has >= 2 steps (v7x has 2 TensorCores to feed)
    tn = max(8, min(_round_up(tile_n, 8), _round_up((n8 + 1) // 2, 8)))
    Np = _round_up(N, tn)

    f32 = jnp.float32
    feat_p = jnp.zeros((Np, Fp), f32).at[:N, :F].set(feature.astype(f32))
    d_p = jnp.zeros((Np, K), f32).at[:N, :].set(dists_max.astype(f32))
    idx_p = jnp.zeros((Np, K), jnp.int32).at[:N, :].set(dists_argmax.astype(jnp.int32))
    idx_flat = idx_p.reshape(-1)   # 1-D so SMEM padding stays small
    # TODO(synk): for very large graphs (Np*K beyond SMEM capacity) indices must be
    # delivered as a tiled VMEM input (or DMA'd pages) instead of scalar prefetch,
    # and the P table kept in HBM with DMA gather.

    def pad2(a, shape):
        return jnp.zeros(shape, f32).at[:a.shape[0], :a.shape[1]].set(a.astype(f32))

    w1 = pad2(params["w1t"], (1, Op))
    b1 = pad2(params["b1"], (1, Op))
    w2 = pad2(params["w2"], (1, Op))
    b2 = params["b2"].astype(f32).reshape(1)          # SMEM scalar
    wa = pad2(params["wa"], (Fp, Op))
    wb = pad2(params["wb"], (Fp, Op))
    bh = pad2(params["bh"], (1, Op))

    grid = (Np // tn,)
    cparams = pltpu.CompilerParams(
        dimension_semantics=("parallel",),
        vmem_limit_bytes=48 * 1024 * 1024)

    # ---- pass 1: projections over the whole padded table ----
    proj, selfp = pl.pallas_call(
        _project_kernel,
        out_shape=(jax.ShapeDtypeStruct((Np, Op), f32),
                   jax.ShapeDtypeStruct((Np, Op), f32)),
        grid=grid,
        in_specs=[
            pl.BlockSpec((tn, Fp), lambda i: (i, 0)),   # feature rows
            pl.BlockSpec((Fp, Op), lambda i: (0, 0)),   # Wa = Wh.T[:F]
            pl.BlockSpec((Fp, Op), lambda i: (0, 0)),   # Wb = Wh.T[F:]
            pl.BlockSpec((1, Op), lambda i: (0, 0)),    # bh
        ],
        out_specs=(pl.BlockSpec((tn, Op), lambda i: (i, 0)),
                   pl.BlockSpec((tn, Op), lambda i: (i, 0))),
        compiler_params=cparams,
    )(feat_p, wa, wb, bh)

    # ---- pass 2: gather + elementwise combine ----
    out_p = pl.pallas_call(
        _combine_kernel,
        out_shape=jax.ShapeDtypeStruct((Np, Op), f32),
        grid_spec=pltpu.PrefetchScalarGridSpec(
            num_scalar_prefetch=1,                       # idx_flat -> SMEM
            grid=grid,
            in_specs=[
                pl.BlockSpec((tn, K), lambda i, idx: (i, 0)),    # dists_max tile
                pl.BlockSpec((Np, Op), lambda i, idx: (0, 0)),   # resident projected table
                pl.BlockSpec((tn, Op), lambda i, idx: (i, 0)),   # self projection tile
                pl.BlockSpec((1, Op), lambda i, idx: (0, 0)),    # dist linear1 weight
                pl.BlockSpec((1, Op), lambda i, idx: (0, 0)),    # dist linear1 bias
                pl.BlockSpec((1, Op), lambda i, idx: (0, 0)),    # dist linear2 weight
                pl.BlockSpec(memory_space=pltpu.MemorySpace.SMEM),  # dist linear2 bias
            ],
            out_specs=pl.BlockSpec((tn, Op), lambda i, idx: (i, 0)),
            scratch_shapes=[pltpu.VMEM((tn * K, Op), f32)],
        ),
        compiler_params=cparams,
    )(idx_flat, d_p, proj, selfp, w1, b1, w2, b2)

    return out_p[:N, :O]


# ---------------- parameter init (matches PyTorch __init__ shapes) ----------------

def _xavier_uniform(key, out_f, in_f, gain):
    bound = gain * math.sqrt(6.0 / (in_f + out_f))
    return jax.random.uniform(key, (out_f, in_f), jnp.float32, -bound, bound)


def init_pgnn_layer_params(key, in_dim, out_dim):
    gain = math.sqrt(2.0)  # nn.init.calculate_gain('relu')
    k1, k2, k3 = jax.random.split(key, 3)
    W1 = _xavier_uniform(k1, out_dim, 1, gain)           # dist_compute.linear1.weight [O,1]
    W2 = _xavier_uniform(k2, 1, out_dim, gain)           # dist_compute.linear2.weight [1,O]
    Wh = _xavier_uniform(k3, out_dim, 2 * in_dim, gain)  # linear_hidden.weight [O,2F]
    WhT = Wh.T                                           # [2F,O]
    return dict(
        w1t=W1.T.reshape(1, out_dim),                    # [1,O]
        b1=jnp.zeros((1, out_dim), jnp.float32),
        w2=W2.reshape(1, out_dim),                       # [1,O]
        b2=jnp.zeros((1, 1), jnp.float32),
        wa=WhT[:in_dim],                                 # [F,O]
        wb=WhT[in_dim:],                                 # [F,O]
        bh=jnp.zeros((1, out_dim), jnp.float32),
    )


def pgnn_forward(x, dists_max, dists_argmax, layer_params):
    # PGNN.forward with layer_num = len(layer_params)
    x = pgnn_layer(x, dists_max, dists_argmax, layer_params[0])
    # TODO(synk): F.dropout with training=True (stochastic) not implemented;
    # this reproduces eval-mode semantics (dropout == identity).
    for p in layer_params[1:]:
        x = pgnn_layer(x, dists_max, dists_argmax, p)
    return x


# ---------------- pure-JAX reference for verification ----------------

def pgnn_layer_ref(feat, d, idx, p):
    h = jnp.maximum(d[..., None] * p["w1t"] + p["b1"], 0.0)
    d_new = jnp.sum(h * p["w2"], axis=-1) + p["b2"][0, 0]
    N, K = idx.shape
    gath = feat[idx.reshape(-1)].reshape(N, K, feat.shape[1])
    ta = jnp.einsum("nkf,fo->nko", gath * d_new[..., None], p["wa"])
    tb = feat @ p["wb"]
    msg = jnp.maximum(ta + tb[:, None, :] + p["bh"], 0.0)
    return jnp.mean(msg, axis=1)


def pgnn_forward_ref(x, d, idx, layer_params):
    for p in layer_params:
        x = pgnn_layer_ref(x, d, idx, p)
    return x


if __name__ == "__main__":
    N, K = 64, 8                 # nodes, anchor sets
    input_dim, hidden_dim, output_dim = 16, 32, 8
    layer_num = 2

    key = jax.random.PRNGKey(0)
    kx, kd, ki, kp1, kp2 = jax.random.split(key, 5)

    x = jax.random.normal(kx, (N, input_dim), jnp.float32)
    dists_max = jax.random.uniform(kd, (N, K), jnp.float32)
    dists_argmax = jax.random.randint(ki, (N, K), 0, N, jnp.int32)

    layer_params = [
        init_pgnn_layer_params(kp1, input_dim, hidden_dim),   # conv_first
        init_pgnn_layer_params(kp2, hidden_dim, output_dim),  # conv_out
    ]
    assert layer_num == 2

    out = pgnn_forward(x, dists_max, dists_argmax, layer_params)
    out = jax.block_until_ready(out)

    ref = pgnn_forward_ref(x, dists_max, dists_argmax, layer_params)
    assert out.shape == (N, output_dim)
    assert jnp.allclose(out, ref, rtol=1e-4, atol=1e-4), "mismatch vs reference"

    print("KERNEL_OK")
</pallas_src>

<mosaic_0001>
module attributes {stable_mosaic.version = 11 : i64} {
  func.func @_project_kernel(%arg0: i32, %arg1: memref<32x128xf32, #tpu.memory_space<vmem>>, %arg2: memref<128x128xf32, #tpu.memory_space<vmem>>, %arg3: memref<128x128xf32, #tpu.memory_space<vmem>>, %arg4: memref<1x128xf32, #tpu.memory_space<vmem>>, %arg5: memref<32x128xf32, #tpu.memory_space<vmem>>, %arg6: memref<32x128xf32, #tpu.memory_space<vmem>>) attributes {dimension_semantics = [#tpu.dimension_semantics<parallel>], iteration_bounds = array<i64: 2>, scalar_prefetch = 0 : i64, scratch_operands = 0 : i64, tpu.core_type = #tpu.core_type<tc>, window_params = [{transform_indices = @transform_0, window_bounds = array<i64: 32, 128>}, {pipeline_mode = #tpu.pipeline_mode<synchronous>, transform_indices = @transform_1, window_bounds = array<i64: 128, 128>}, {pipeline_mode = #tpu.pipeline_mode<synchronous>, transform_indices = @transform_2, window_bounds = array<i64: 128, 128>}, {pipeline_mode = #tpu.pipeline_mode<synchronous>, transform_indices = @transform_3, window_bounds = array<i64: 1, 128>}, {transform_indices = @transform_4, window_bounds = array<i64: 32, 128>}, {transform_indices = @transform_5, window_bounds = array<i64: 32, 128>}]} {
    %c0 = arith.constant 0 : index
    %c0_0 = arith.constant 0 : index
    %0 = vector.load %arg1[%c0, %c0_0] : memref<32x128xf32, #tpu.memory_space<vmem>>, vector<32x128xf32>
    %c0_1 = arith.constant 0 : index
    %c0_2 = arith.constant 0 : index
    %1 = vector.load %arg2[%c0_1, %c0_2] : memref<128x128xf32, #tpu.memory_space<vmem>>, vector<128x128xf32>
    %cst = arith.constant dense<0.000000e+00> : vector<32x128xf32>
    %2 = tpu.matmul %0, %1, %cst {dimension_numbers = #tpu.dot_dimension_numbers<[1], [0], [0], [1], [0, 0, 1, 1], [], []>} : vector<32x128xf32>, vector<128x128xf32>, vector<32x128xf32> -> vector<32x128xf32>
    %c0_3 = arith.constant 0 : index
    %c0_4 = arith.constant 0 : index
    %3 = vector.load %arg5[%c0_3, %c0_4] : memref<32x128xf32, #tpu.memory_space<vmem>>, vector<32x128xf32>
    tpu.vector_store %arg5[%c0_3, %c0_4], %2 {strides = array<i32>} : memref<32x128xf32, #tpu.memory_space<vmem>>, vector<32x128xf32>,
    %c0_5 = arith.constant 0 : index
    %c0_6 = arith.constant 0 : index
    %4 = vector.load %arg3[%c0_5, %c0_6] : memref<128x128xf32, #tpu.memory_space<vmem>>, vector<128x128xf32>
    %cst_7 = arith.constant dense<0.000000e+00> : vector<32x128xf32>
    %5 = tpu.matmul %0, %4, %cst_7 {dimension_numbers = #tpu.dot_dimension_numbers<[1], [0], [0], [1], [0, 0, 1, 1], [], []>} : vector<32x128xf32>, vector<128x128xf32>, vector<32x128xf32> -> vector<32x128xf32>
    %c0_8 = arith.constant 0 : index
    %c0_9 = arith.constant 0 : index
    %6 = vector.load %arg4[%c0_8, %c0_9] : memref<1x128xf32, #tpu.memory_space<vmem>>, vector<1x128xf32>
    %7 = vector.broadcast %6 : vector<1x128xf32> to vector<32x128xf32>
    %8 = arith.addf %5, %7 : vector<32x128xf32>
    %c0_10 = arith.constant 0 : index
    %c0_11 = arith.constant 0 : index
    %9 = vector.load %arg6[%c0_10, %c0_11] : memref<32x128xf32, #tpu.memory_space<vmem>>, vector<32x128xf32>
    tpu.vector_store %arg6[%c0_10, %c0_11], %8 {strides = array<i32>} : memref<32x128xf32, #tpu.memory_space<vmem>>, vector<32x128xf32>,
    return
  }
  func.func @transform_0(%arg0: i32) -> (i32, i32) {
    %c0_i32 = arith.constant 0 : i32
    %c0_i32_0 = arith.constant 0 : i32
    return %arg0, %c0_i32 : i32, i32
  }
  func.func @transform_1(%arg0: i32) -> (i32, i32) {
    %c0_i32 = arith.constant 0 : i32
    %c0_i32_0 = arith.constant 0 : i32
    %c0_i32_1 = arith.constant 0 : i32
    return %c0_i32, %c0_i32_0 : i32, i32
  }
  func.func @transform_2(%arg0: i32) -> (i32, i32) {
    %c0_i32 = arith.constant 0 : i32
    %c0_i32_0 = arith.constant 0 : i32
    %c0_i32_1 = arith.constant 0 : i32
    return %c0_i32, %c0_i32_0 : i32, i32
  }
  func.func @transform_3(%arg0: i32) -> (i32, i32) {
    %c0_i32 = arith.constant 0 : i32
    %c0_i32_0 = arith.constant 0 : i32
    %c0_i32_1 = arith.constant 0 : i32
    return %c0_i32, %c0_i32_0 : i32, i32
  }
  func.func @transform_4(%arg0: i32) -> (i32, i32) {
    %c0_i32 = arith.constant 0 : i32
    %c0_i32_0 = arith.constant 0 : i32
    return %arg0, %c0_i32 : i32, i32
  }
  func.func @transform_5(%arg0: i32) -> (i32, i32) {
    %c0_i32 = arith.constant 0 : i32
    %c0_i32_0 = arith.constant 0 : i32
    return %arg0, %c0_i32 : i32, i32
  }
}

</mosaic_0001>

<bundles_post_ra>
// kernel: tpu_custom_call.1
= control target key start
LH: loop header
LB: loop body
LE: loop exit
PB: predicated region body
PF: predicated region fallthrough
CT: control target
= control target key end

     0   :  { %11 = vsyncpa [#allocation3], 0  ;;  %s1471_s0 = inlined_call_operand.hbm [shape: f32[64,128], index: 0, kind: input, shape index: {}]   ;;  %s1472_s1 = inlined_call_operand.hbm [shape: f32[128,128], index: 1, kind: input, shape index: {}]   ;;  %s1473_s2 = inlined_call_operand.hbm [shape: f32[128,128], index: 2, kind: input, shape index: {}]   ;;  %s1474_s3 = inlined_call_operand.vmem [shape: f32[1,128], index: 3, kind: input, shape index: {}]   ;;  %s1475_s4 = inlined_call_operand.hbm [shape: f32[64,128], index: 4, kind: output, shape index: {0}]   ;;  %s1476_s5 = inlined_call_operand.hbm [shape: f32[64,128], index: 5, kind: output, shape index: {1}]  }
   0x1   :  { %13 = vsyncpa [#allocation3 + $0x1], 0 }
   0x2   :  { %14 = vsyncpa [#allocation6], 0 }
   0x3   :  { %15 = vsyncpa [#allocation4], 0 }
   0x4   :  { %17 = vsyncpa [#allocation4 + $0x1], 0 }
   0x5   :  { %18 = vsyncpa [#allocation10], 0 }
   0x6   :  { %20 = vsyncpa [#allocation10 + $0x1], 0  ;;  %s1177_s18 = smov 0   ;;  %s1179_s19 = smov 0  }
   0x7   :  { %s1181_s20 = smov 0   ;;  %s1183_s21 = smov 0  }
   0x8 LB: > { %s1198_s22 = sadd.s32 4294967295, %s1136_s21   ;;  %s666_s23 = sadd.s32 4294967294, %s1136_s21   ;;  %s1136_s21 = sphi %s1183_s21, %s1496_s21   ;;  %s1132_s20 = sphi %s1181_s20, %s1495_s20   ;;  %s1128_s19 = sphi %s1179_s19, %s1494_s19   ;;  %s1124_s18 = sphi %s1177_s18, %s1493_s18  }
   0x9   : > { %p46_p0 = scmp.ne.s32.totalorder %s1128_s19, %s1124_s18  ;;  %p1477_p1 = scmp.eq.s32.totalorder %s1198_s22, 0 }
   0xa   : > { %p139_p3 = scmp.eq.s32.totalorder %s666_s23, 1  ;;  %p667_p5 = scmp.ge.s32.totalorder %s1136_s21, 1 }
   0xb   : > { %p1207_p4 = por %p1477_p1, %p46_p0  ;;  %p172_p7 = scmp.lt.s32.totalorder %s1136_s21, 3 }
   0xc   : > { %p1212_p6 = por %p139_p3, %p46_p0  ;;  %s1138_s27 = smov [#allocation5]  }
   0xd   : > { %s1480_s24 = scalar_select %p1207_p4, 1, 0 }
   0xe   : > { %s1481_s25 = scalar_select %p1212_p6, 1, 0 }
   0xf   : > { %p1217_p8 = pnand %p667_p5, %p172_p7  ;;  %s184_s28 = sshll.u32 %s1138_s27, 4  ;;  %s1221_s28 = int_to_ptr.vmem [resolvable:$true] %s184_s28 }
  0x10   : > { %s1139_s30 = smov [#allocation7]   ;;  %s948_s9 = scalar_lea.hbm %s1472_s1, 2048 }
  0x11   : > { %p886_p9 = pneg %p1217_p8  ;;  %s197_s6 = sshll.u32 %s1139_s30, 4  ;;  %s1232_s6 = int_to_ptr.vmem [resolvable:$true] %s197_s6 }
  0x12   : > { %p949_p12 = scmp.ne.s32.totalorder %s1472_s1, %s948_s9  ;;  %p955_p5 = scmp.lt.u32.totalorder %s948_s9, %s1472_s1 }
  0x13   : > { %p1228_p11 = pnand %p886_p9, %p1477_p1 }
  0x15   : > { %p950_p13 = pneg %p1228_p11 }
  0x17   : > { %p951_p0 = pnand %p950_p13, %p949_p12 }
  0x19   : > { %p952_p3 = pneg %p951_p0 }
  0x1b   : > { %p957_p7 = pnand %p955_p5, %p952_p3 }
  0x1d   : > { %960 = shalt.err (!%p957_p7)
}
  0x1e   : > { %s961_s14 = scalar_lea.vmem %s1221_s28, 2048  ;;  %p969_p2 = scmp.lt.s32.totalorder %s1221_s28, %s1221_s28 }
  0x1f   : > { %p962_p9 = scmp.ne.s32.totalorder %s1221_s28, %s961_s14  ;;  %p970_p12 = scmp.lt.s32.totalorder %s961_s14, %s961_s14 }
  0x21   : > { %p964_p10 = pnand %p962_p9, %p950_p13  ;;  %p971_p0 = por %p970_p12, %p969_p2 }
  0x23   : > { %p965_p1 = pneg %p964_p10 }
  0x25   : > { %p972_p6 = pnand %p971_p0, %p965_p1 }
  0x27   : > { %975 = shalt.err (!%p972_p6)
}
  0x28   : > { %s1140_s15 = smov 128   ;;  %s1141_s16 = smov 8  }
  0x29   : > { %889 = dma.hbm_to_vmem [thread:$0]  (!%p1228_p11), %s1472_s1, 2048, %s1221_s28, [#allocation6], %s1140_s15, %s1140_s15, %s1141_s16  }
  0x2a   : > { %s976_s7 = scalar_lea.hbm %s1473_s2, 2048 }
  0x2b   : > { %p977_p1 = scmp.ne.s32.totalorder %s1473_s2, %s976_s7  ;;  %p983_p10 = scmp.lt.u32.totalorder %s976_s7, %s1473_s2 }
  0x2d   : > { %p979_p2 = pnand %p977_p1, %p950_p13 }
  0x2f   : > { %p980_p6 = pneg %p979_p2 }
  0x31   : > { %p985_p3 = pnand %p983_p10, %p980_p6 }
  0x33   : > { %988 = shalt.err (!%p985_p3)
}
  0x34   : > { %s989_s28 = scalar_lea.vmem %s1232_s6, 2048  ;;  %p997_p12 = scmp.lt.s32.totalorder %s1232_s6, %s1232_s6 }
  0x35   : > { %p990_p5 = scmp.ne.s32.totalorder %s1232_s6, %s989_s28  ;;  %p998_p0 = scmp.lt.s32.totalorder %s989_s28, %s989_s28 }
  0x37   : > { %p992_p7 = pnand %p990_p5, %p950_p13  ;;  %p999_p1 = por %p998_p0, %p997_p12 }
  0x39   : > { %p993_p9 = pneg %p992_p7 }
  0x3b   : > { %p1000_p2 = pnand %p999_p1, %p993_p9 }
  0x3d   : > { %1003 = shalt.err (!%p1000_p2)
}
  0x3e   : > { %892 = dma.hbm_to_vmem [thread:$0]  (!%p1228_p11), %s1473_s2, 2048, %s1232_s6, [#allocation6], %s1140_s15, %s1140_s15, %s1141_s16  }
  0x3f   : > { %s1293_s29 = sadd.s32 1, %s1136_s21   ;;  %s33_s14 = sadd.s32 1, %s1132_s20 }
  0x40   : > { %s30_s17 = ssub.s32 %s1136_s21, %s1293_s29  ;;  %p40_p13 = scmp.ne.s32.totalorder %s1132_s20, %s1128_s19 }
  0x41   : > { %p31_p6 = scmp.eq.s32.totalorder %s30_s17, 0  ;;  %p41_p10 = scmp.eq.s32.totalorder %s1136_s21, 0 }
  0x42   : > { %p1484_p3 = scmp.eq.s32.totalorder %s1198_s22, 1  ;;  %p906_p7 = scmp.lt.s32.totalorder %s1136_s21, 2 }
  0x43   : > { %s1309_s27 = scalar_select %p31_p6, %s1132_s20, %s33_s14  }
  0x44   : > { %p1303_p5 = por %p1484_p3, %p40_p13  ;;  %p42_p9 = por %p41_p10, %p40_p13 }
  0x45   : > { %s214_s30 = sand.u32 1, %s1132_s20   ;;  %s689_s6 = sshll.u32 %s1136_s21, 9 }
  0x46   : > { %s1485_s23 = scalar_select %p1303_p5, 1, 0 }
  0x47   : > { %s671_s7 = sshll.u32 %s214_s30, 5  ;;  %s1316_s10 = scalar_lea.hbm %s1471_s0, %s689_s6 }
  0x48   : > { %s218_s11 = scalar_lea.vmem [#allocation2], %s671_s7  ;;  %p1320_p11 = pnand %p906_p7, %p42_p9 }
  0x49   : > { %s225_s28 = sshll.u32 %s218_s11, 4  ;;  %s1324_s13 = scalar_lea.sflag [#allocation3], %s214_s30  ;;  %s1318_s28 = int_to_ptr.vmem [resolvable:$true] %s225_s28 }
  0x4a   : > { %s1004_s14 = scalar_lea.hbm %s1316_s10, 512  ;;  %p1006_p0 = pneg %p1320_p11 }
  0x4b   : > { %p1005_p12 = scmp.ne.s32.totalorder %s1316_s10, %s1004_s14  ;;  %s1009_s6 = scalar_lea.hbm %s1471_s0, 1024 }
  0x4c   : > { %p1010_p13 = scmp.lt.u32.totalorder %s1316_s10, %s1471_s0  ;;  %p1011_p6 = scmp.lt.u32.totalorder %s1009_s6, %s1004_s14 }
  0x4d   : > { %p1007_p1 = pnand %p1006_p0, %p1005_p12  ;;  %p1013_p3 = scmp.lt.u32.totalorder %s1004_s14, %s1316_s10 }
  0x4e   : > { %p1012_p10 = por %p1011_p6, %p1010_p13 }
  0x4f   : > { %p1008_p2 = pneg %p1007_p1 }
  0x50   : > { %p1014_p7 = por %p1013_p3, %p1012_p10 }
  0x52   : > { %p1015_p9 = pnand %p1014_p7, %p1008_p2 }
  0x54   : > { %1018 = shalt.err (!%p1015_p9)
}
  0x55   : > { %s1019_s30 = scalar_lea.vmem %s1318_s28, 512  ;;  %s1142_s11 = smov [#allocation2]  }
  0x56   : > { %p1020_p12 = scmp.ne.s32.totalorder %s1318_s28, %s1019_s30  ;;  %s1024_s17 = sshll.u32 %s1142_s11, 4  ;;  %s1025_s17 = int_to_ptr.vmem [resolvable:$false] %s1024_s17 }
  0x57   : > { %s1026_s7 = scalar_lea.vmem %s1025_s17, 1024  ;;  %p1027_p4 = scmp.lt.s32.totalorder %s1318_s28, %s1025_s17 }
  0x58   : > { %p1022_p1 = pnand %p1020_p12, %p1006_p0  ;;  %p1028_p13 = scmp.lt.s32.totalorder %s1026_s7, %s1019_s30 }
  0x5a   : > { %p1023_p5 = pneg %p1022_p1  ;;  %p1029_p6 = por %p1028_p13, %p1027_p4 }
  0x5c   : > { %p1030_p10 = pnand %p1029_p6, %p1023_p5 }
  0x5e   : > { %1033 = shalt.err (!%p1030_p10)
}
  0x5f   : > { %896 = dma.hbm_to_vmem [thread:$0]  (!%p1320_p11), %s1316_s10, 512, %s1318_s28, %s1324_s13, %s1140_s15, %s1140_s15, %s1141_s16  }
  0x60   : > { %237 = sbr.rel (%p1217_p8) target bundleno = 399 (0x18f), region = 36  ;;  %s1358_s14 = sand.u32 (!%p1217_p8), 1, %s1128_s19  }
  0x61   : > { %s1361_s6 = sshll.u32 (!%p1217_p8), %s1358_s14, 5  ;;  %s240_s12 = scalar_lea.sflag (!%p1217_p8), [#allocation3], %s1358_s14 }
  0x62   : > { %s1365_s8 = scalar_lea.vmem (!%p1217_p8), [#allocation2], %s1361_s6  ;;  %p1487_p4 = scmp.ne.s32.totalorder (!%p1217_p8), %s1480_s24, 0 }
  0x67   : > { %1107 = dma.done.wait (%p1487_p4), %s240_s12, 512  }
  0x68   : > { %1109 = vsyncadd (%p1487_p4), %s240_s12, 4294966784  ;;  %p1488_p5 = scmp.eq.s32.totalorder %s1198_s22, 0 }
  0x6a   : > { %1111 = dma.done.wait (%p1488_p5), [#allocation6], 4096   ;;  %p1489_p8 = pmov %p1488_p5 }
  0x6b   : > { %v395_v0 = vld [vmem:[#allocation7] sm:$0xff]  ;;  %v396_v1 = vld [vmem:[#allocation7 + $0x8] sm:$0xff]  ;;  %v397_v5 = vld [vmem:[#allocation7 + $0x10] sm:$0xff]  ;;  %s282_s15 = scalar_lea.vmem [#allocation9], %s1361_s6  ;;  %s275_s10 = scalar_lea.vmem [#allocation8], %s1361_s6 }
  0x6c   : > { %1113 = vsyncadd (%p1489_p8), [#allocation6], 4294963200  ;;  %v290_v2 = vld [vmem:[#allocation5] sm:$0xff]  ;;  %v840_v3 = vpack.c.bf16 %v396_v1, %v395_v0  ;;  %v291_v4 = vld [vmem:[#allocation5 + $0x8] sm:$0xff]  ;;  %s542_s16 = sshll.u32 %s282_s15, 4  ;;  %s526_s28 = sshll.u32 %s275_s10, 4  ;;  %s1385_s16 = int_to_ptr.vmem [resolvable:$true] %s542_s16  ;;  %s1387_s28 = int_to_ptr.vmem [resolvable:$true] %s526_s28 }
  0x6d   : > { %v398_v6 = vld [vmem:[#allocation7 + $0x18] sm:$0xff]  ;;  %v808_v7 = vpack.c.bf16 %v291_v4, %v290_v2  ;;  %v292_v9 = vld [vmem:[#allocation5 + $0x10] sm:$0xff]  ;;  %v399_v11 = vld [vmem:[#allocation7 + $0x20] sm:$0xff]  ;;  %s690_s13 = sshll.u32 %s1198_s22, 9  ;;  %s508_s6 = scalar_lea.sflag [#allocation4], %s1358_s14 }
  0x6e   : > { %v844_v8 = vpack.c.bf16 %v398_v6, %v397_v5  ;;  %v293_v10 = vld [vmem:[#allocation5 + $0x18] sm:$0xff]  ;;  %841 = vmatprep.subr.bf16.mxu1 %v840_v3  ;;  %v400_v13 = vld [vmem:[#allocation7 + $0x28] sm:$0xff]  ;;  %v294_v14 = vld [vmem:[#allocation5 + $0x20] sm:$0xff]  ;;  %s1392_s11 = scalar_lea.hbm %s1475_s4, %s690_s13  ;;  %s1397_s7 = scalar_lea.hbm %s1476_s5, %s690_s13 }
  0x6f   : > { %v812_v12 = vpack.c.bf16 %v293_v10, %v292_v9  ;;  %v295_v15 = vld [vmem:[#allocation5 + $0x28] sm:$0xff]  ;;  %809 = vmatprep.subr.bf16.mxu0 %v808_v7  ;;  %843 = vmatpush3.bf16.msra.mxu1 %v840_v3  ;;  %v848_v16 = vpack.c.bf16 %v400_v13, %v399_v11  ;;  %v401_v18 = vld [vmem:[#allocation7 + $0x30] sm:$0xff]  ;;  %v402_v19 = vld [vmem:[#allocation7 + $0x38] sm:$0xff]  ;;  %s1034_s12 = scalar_lea.vmem %s1387_s28, 512  ;;  %p1490_p0 = scmp.ne.s32.totalorder %s1485_s23, 0 }
  0x70   : > { %811 = vmatpush3.bf16.msra.mxu0 %v808_v7  ;;  %845 = vmatprep.subr.bf16.mxu1 %v844_v8  ;;  %v816_v17 = vpack.c.bf16 %v295_v15, %v294_v14  ;;  %v296_v20 = vld [vmem:[#allocation5 + $0x30] sm:$0xff]  ;;  %v297_v21 = vld [vmem:[#allocation5 + $0x38] sm:$0xff]  ;;  %v852_v22 = vpack.c.bf16 %v402_v19, %v401_v18  ;;  %v403_v24 = vld [vmem:[#allocation7 + $0x40] sm:$0xff]  ;;  %p1035_p11 = scmp.ne.s32.totalorder %s1387_s28, %s1034_s12 }
  0x71   : > { %813 = vmatprep.subr.bf16.mxu0 %v812_v12  ;;  %v820_v23 = vpack.c.bf16 %v297_v21, %v296_v20  ;;  %v404_v25 = vld [vmem:[#allocation7 + $0x48] sm:$0xff]  ;;  %v286_v26 = vld [vmem:[%s1365_s8] sm:$0xff]  ;;  %v405_v31 = vld [vmem:[#allocation7 + $0x50] sm:$0xff] }
  0x72   : > { %v298_v27 = vld [vmem:[#allocation5 + $0x40] sm:$0xff]  ;;  %v299_v28 = vld [vmem:[#allocation5 + $0x48] sm:$0xff]  ;;  %802 = vmatprep.mubr.f32.mxu1 %v286_v26  ;;  %764 = vmatprep.mubr.f32.mxu0 %v286_v26  ;;  %v856_v29 = vpack.c.bf16 %v404_v25, %v403_v24  ;;  %v406_v32 = vld [vmem:[#allocation7 + $0x58] sm:$0xff]  ;;  %p1036_p2 = pnand %p1035_p11, %p1490_p0 }
  0x73   : > { %847 = vmatpush3.bf16.msra.mxu1 %v844_v8  ;;  %v824_v30 = vpack.c.bf16 %v299_v28, %v298_v27  ;;  %v300_v33 = vld [vmem:[#allocation5 + $0x50] sm:$0xff]  ;;  %v301_v34 = vld [vmem:[#allocation5 + $0x58] sm:$0xff]  ;;  %v860_v35 = vpack.c.bf16 %v406_v32, %v405_v31  ;;  %v407_v37 = vld [vmem:[#allocation7 + $0x60] sm:$0xff] }
  0x74   : > { %815 = vmatpush3.bf16.msra.mxu0 %v812_v12  ;;  %849 = vmatprep.subr.bf16.mxu1 %v848_v16  ;;  %v828_v36 = vpack.c.bf16 %v301_v34, %v300_v33  ;;  %v408_v38 = vld [vmem:[#allocation7 + $0x68] sm:$0xff]  ;;  %v302_v39 = vld [vmem:[#allocation5 + $0x60] sm:$0xff]  ;;  %v409_v43 = vld [vmem:[#allocation7 + $0x70] sm:$0xff]  ;;  %p1037_p3 = pneg %p1036_p2 }
  0x75   : > { %817 = vmatprep.subr.bf16.mxu0 %v816_v17  ;;  %v303_v40 = vld [vmem:[#allocation5 + $0x68] sm:$0xff]  ;;  %v864_v41 = vpack.c.bf16 %v408_v38, %v407_v37  ;;  %v410_v44 = vld [vmem:[#allocation7 + $0x78] sm:$0xff]  ;;  %v304_v45 = vld [vmem:[#allocation5 + $0x70] sm:$0xff] }
  0x76   : > { %v832_v42 = vpack.c.bf16 %v303_v40, %v302_v39  ;;  %v305_v46 = vld [vmem:[#allocation5 + $0x78] sm:$0xff]  ;;  %v868_v47 = vpack.c.bf16 %v410_v44, %v409_v43  ;;  %v287_v49 = vld [vmem:[%s1365_s8 + $0x8] sm:$0xff]  ;;  %v288_v50 = vld [vmem:[%s1365_s8 + $0x10] sm:$0xff] }
  0x77   : > { %851 = vmatpush3.bf16.msra.mxu1 %v848_v16  ;;  %v836_v48 = vpack.c.bf16 %v305_v46, %v304_v45  ;;  %v289_v51 = vld [vmem:[%s1365_s8 + $0x18] sm:$0xff]  ;;  %v680_v52 = vld [vmem:[%s1474_s3] ss:$0 sm:$0xff]  ;;  %s1143_s8 = smov [#allocation8]  }
  0x78   : > { %819 = vmatpush3.bf16.msra.mxu0 %v816_v17  ;;  %853 = vmatprep.subr.bf16.mxu1 %v852_v22  ;;  %s1038_s24 = sshll.u32 %s1143_s8, 4  ;;  %s1039_s24 = int_to_ptr.vmem [resolvable:$false] %s1038_s24 }
  0x79   : > { %821 = vmatprep.subr.bf16.mxu0 %v820_v23  ;;  %s1040_s26 = scalar_lea.vmem %s1039_s24, 1024  ;;  %p1041_p7 = scmp.lt.s32.totalorder %s1387_s28, %s1039_s24 }
  0x7a   : > { %p1042_p9 = scmp.lt.s32.totalorder %s1040_s26, %s1034_s12 }
  0x7b   : > { %855 = vmatpush3.bf16.msra.mxu1 %v852_v22 }
  0x7c   : > { %823 = vmatpush3.bf16.msra.mxu0 %v820_v23  ;;  %857 = vmatprep.subr.bf16.mxu1 %v856_v29  ;;  %p1043_p12 = por %p1042_p9, %p1041_p7 }
  0x7d   : > { %825 = vmatprep.subr.bf16.mxu0 %v824_v30 }
  0x7e   : > { %p1044_p1 = pnand %p1043_p12, %p1037_p3 }
  0x7f   : > { %859 = vmatpush3.bf16.msra.mxu1 %v856_v29 }
  0x80   : > { %827 = vmatpush3.bf16.msra.mxu0 %v824_v30  ;;  %861 = vmatprep.subr.bf16.mxu1 %v860_v35 }
  0x81   : > { %829 = vmatprep.subr.bf16.mxu0 %v828_v36 }
  0x83   : > { %863 = vmatpush3.bf16.msra.mxu1 %v860_v35 }
  0x84   : > { %831 = vmatpush3.bf16.msra.mxu0 %v828_v36  ;;  %865 = vmatprep.subr.bf16.mxu1 %v864_v41 }
  0x85   : > { %833 = vmatprep.subr.bf16.mxu0 %v832_v42 }
  0x87   : > { %867 = vmatpush3.bf16.msra.mxu1 %v864_v41 }
  0x88   : > { %835 = vmatpush3.bf16.msra.mxu0 %v832_v42  ;;  %869 = vmatprep.subr.bf16.mxu1 %v868_v47 }
  0x89   : > { %837 = vmatprep.subr.bf16.mxu0 %v836_v48 }
  0x8b   : > { %871 = vmatpush3.bf16.msra.mxu1 %v868_v47 }
  0x8c   : > { %839 = vmatpush3.bf16.msra.mxu0 %v836_v48 }
  0x8e   : > { %803 = vmatmul.mubr.f32.vlgmr.msra.gmra.mrb[0].mxu1 %v287_v49 }
  0x8f   : > { %765 = vmatmul.mubr.f32.vlgmr.msra.gmra.mrb[0].mxu0 %v287_v49  ;;  %805 = vmatprep.mubr.f32.mxu1 %v288_v50 }
  0x90   : > { %767 = vmatprep.mubr.f32.mxu0 %v288_v50 }
  0x92   : > { %806 = vmatmul.mubr.f32.gmra.mrb[2].mxu1 %v289_v51 }
  0x93   : > { %768 = vmatmul.mubr.f32.gmra.mrb[2].mxu0 %v289_v51 }
 0x161   : > { %v804_v53 = vpop.f32.mrb[0].mxu1 }
 0x162   : > { %v490_v54 = vadd.f32 %v804_v53, %v680_v52  ;;  %v766_v55 = vpop.f32.mrb[0].mxu0  ;;  %v484_v56 = vpop.f32.mrb[1].mxu1 }
 0x163   : > { %392 = vst [vmem:[%s275_s10 + $0x8] sm:$0xff] %v766_v55  ;;  %v485_v57 = vadd.f32 %v680_v52, %v484_v56  ;;  %v372_v58 = vpop.f32.mrb[1].mxu0 }
 0x164   : > { %504 = vst [vmem:[%s282_s15 + $0x8] sm:$0xff] %v490_v54  ;;  %391 = vst [vmem:[%s275_s10] sm:$0xff] %v372_v58 }
 0x165   : > { %503 = vst [vmem:[%s282_s15] sm:$0xff] %v485_v57  ;;  %v807_v59 = vpop.f32.mrb[2].mxu1 }
 0x166   : > { %v500_v60 = vadd.f32 %v807_v59, %v680_v52  ;;  %v769_v61 = vpop.f32.mrb[2].mxu0  ;;  %v494_v62 = vpop.f32.mrb[3].mxu1 }
 0x167   : > { %394 = vst [vmem:[%s275_s10 + $0x18] sm:$0xff] %v769_v61  ;;  %v495_v63 = vadd.f32 %v680_v52, %v494_v62  ;;  %v382_v0 = vpop.f32.mrb[3].mxu0 }
 0x168   : > { %506 = vst [vmem:[%s282_s15 + $0x18] sm:$0xff] %v500_v60  ;;  %393 = vst [vmem:[%s275_s10 + $0x10] sm:$0xff] %v382_v0 }
 0x169   : > { %505 = vst [vmem:[%s282_s15 + $0x10] sm:$0xff] %v495_v63 }
 0x16a   : > { %1047 = shalt.err (!%p1044_p1)
}
 0x16b   : > { %s1048_s15 = scalar_lea.hbm %s1392_s11, 512  ;;  %s1052_s9 = scalar_lea.hbm %s1475_s4, 1024 }
 0x16c   : > { %p1049_p13 = scmp.ne.s32.totalorder %s1392_s11, %s1048_s15  ;;  %p1053_p4 = scmp.lt.u32.totalorder %s1392_s11, %s1475_s4 }
 0x16d   : > { %p1054_p5 = scmp.lt.u32.totalorder %s1052_s9, %s1048_s15  ;;  %p1056_p11 = scmp.lt.u32.totalorder %s1048_s15, %s1392_s11 }
 0x16e   : > { %p1050_p6 = pnand %p1049_p13, %p1490_p0 }
 0x16f   : > { %p1055_p8 = por %p1054_p5, %p1053_p4 }
 0x170   : > { %p1051_p10 = pneg %p1050_p6 }
 0x171   : > { %p1057_p2 = por %p1056_p11, %p1055_p8 }
 0x173   : > { %p1058_p3 = pnand %p1057_p2, %p1051_p10 }
 0x175   : > { %1061 = shalt.err (!%p1058_p3)
}
 0x176   : > { %s1144_s17 = smov 128   ;;  %s1145_s12 = smov 8  }
 0x177   : > { %882 = dma.vmem_to_hbm [thread:$0]  (%p1490_p0), %s1387_s28, 512, %s1392_s11, %s508_s6, %s1144_s17, %s1144_s17, %s1145_s12  }
 0x178   : > { %s513_s8 = scalar_lea.sflag [#allocation10], %s1358_s14  ;;  %s1062_s24 = scalar_lea.vmem %s1385_s16, 512 }
 0x179   : > { %p1063_p7 = scmp.ne.s32.totalorder %s1385_s16, %s1062_s24  ;;  %s1146_s26 = smov [#allocation9]  }
 0x17a   : > { %s1066_s15 = sshll.u32 %s1146_s26, 4  ;;  %s1067_s15 = int_to_ptr.vmem [resolvable:$false] %s1066_s15 }
 0x17b   : > { %p1064_p9 = pnand %p1063_p7, %p1490_p0  ;;  %s1068_s10 = scalar_lea.vmem %s1067_s15, 1024 }
 0x17c   : > { %p1069_p1 = scmp.lt.s32.totalorder %s1385_s16, %s1067_s15  ;;  %p1070_p13 = scmp.lt.s32.totalorder %s1068_s10, %s1062_s24 }
 0x17d   : > { %p1065_p12 = pneg %p1064_p9 }
 0x17e   : > { %p1071_p6 = por %p1070_p13, %p1069_p1 }
 0x180   : > { %p1072_p10 = pnand %p1071_p6, %p1065_p12 }
 0x182   : > { %1075 = shalt.err (!%p1072_p10)
}
 0x183   : > { %s1076_s28 = scalar_lea.hbm %s1397_s7, 512  ;;  %s1080_s13 = scalar_lea.hbm %s1476_s5, 1024 }
 0x184   : > { %p1077_p4 = scmp.ne.s32.totalorder %s1397_s7, %s1076_s28  ;;  %p1081_p11 = scmp.lt.u32.totalorder %s1397_s7, %s1476_s5 }
 0x185   : > { %p1082_p2 = scmp.lt.u32.totalorder %s1080_s13, %s1076_s28  ;;  %p1084_p7 = scmp.lt.u32.totalorder %s1076_s28, %s1397_s7 }
 0x186   : > { %p1078_p5 = pnand %p1077_p4, %p1490_p0 }
 0x187   : > { %p1083_p3 = por %p1082_p2, %p1081_p11 }
 0x188   : > { %p1079_p8 = pneg %p1078_p5 }
 0x189   : > { %p1085_p9 = por %p1084_p7, %p1083_p3 }
 0x18b   : > { %p1086_p12 = pnand %p1085_p9, %p1079_p8 }
 0x18d   : > { %1089 = shalt.err (!%p1086_p12)
}
 0x18e   : > { %883 = dma.vmem_to_hbm [thread:$0]  (%p1490_p0), %s1385_s16, 512, %s1397_s7, %s513_s8, %s1144_s17, %s1144_s17, %s1145_s12  }
 0x18f PF: > { %s557_s22 = sand.u32 1, %s1124_s18   ;;  %p1491_p1 = scmp.ne.s32.totalorder %s1481_s25, 0 }
 0x190   : > { %p1492_p13 = scmp.ge.s32.totalorder %s1136_s21, 2  ;;  %s558_s24 = scalar_lea.sflag [#allocation4], %s557_s22 }
 0x192   : > { %p898_p6 = pnand %p1492_p13, %p1491_p1 }
 0x194   : > { %1115 = dma.done.wait (!%p898_p6), %s558_s24, 512  }
 0x195   : > { %1117 = vsyncadd (!%p898_p6), %s558_s24, 4294966784  ;;  %s567_s23 = scalar_lea.sflag [#allocation10], %s557_s22 }
 0x196   : > { %1119 = dma.done.wait (!%p898_p6), %s567_s23, 512  }
 0x197   : > { %1121 = vsyncadd (!%p898_p6), %s567_s23, 4294966784  ;;  %p23_p0 = scmp.ge.s32.totalorder %s1293_s29, 4   ;;  %s1493_s18 = smov %s1128_s19 }
 0x198   : > { %s1494_s19 = smov %s1132_s20  ;;  %s1495_s20 = smov %s1309_s27 }
 0x199   : > { %s1496_s21 = smov %s1293_s29  ;;  %25 = sbr.rel (!%p23_p0) target bundleno = 8 (0x8), region = 106 }
 0x1a0   :  { %572 = vsyncpa [#allocation3], 1 }
 0x1a1   :  { %574 = vsyncpa [#allocation3 + $0x1], 1 }
 0x1a2   :  { %575 = vsyncpa [#allocation6], 1 }
 0x1a3   :  { %576 = vsyncpa [#allocation4], 1 }
 0x1a4   :  { %578 = vsyncpa [#allocation4 + $0x1], 1 }
 0x1a5   :  { %579 = vsyncpa [#allocation10], 1 }
 0x1a6   :  { %581 = vsyncpa [#allocation10 + $0x1], 1 }

</bundles_post_ra>
